<compile_context>
chip_gen: v7x
topology: tpu7x:2x2x1
jax: 0.10.0
libtpu: 0.0.40
codegen_flags: <defaults>
</compile_context>

<pallas_src>
import functools
import numpy as np

import jax
import jax.numpy as jnp
from jax import lax
from jax.experimental import pallas as pl
from jax.experimental.pallas import tpu as pltpu


# ----------------------------- schedules / embeddings ------------------------

def cosine_beta_schedule(timesteps: int, s: float = 0.008) -> np.ndarray:
    steps = timesteps + 1
    x = np.linspace(0, steps, steps)
    alphas_cumprod = np.cos(((x / steps) + s) / (1 + s) * np.pi * 0.5) ** 2
    alphas_cumprod = alphas_cumprod / alphas_cumprod[0]
    betas = 1.0 - (alphas_cumprod[1:] / alphas_cumprod[:-1])
    return np.clip(betas, 0.0, 0.999).astype(np.float32)


def sinusoidal_emb(t_vals: np.ndarray, dim: int) -> np.ndarray:
    half = dim // 2
    freqs = np.exp(np.arange(half) * -(np.log(10000.0) / (half - 1)))
    args = t_vals[:, None].astype(np.float64) * freqs[None, :]
    return np.concatenate([np.sin(args), np.cos(args)], axis=-1).astype(np.float32)


# --------------------------------- kernel ------------------------------------

def diffusion_kernel(x_init_ref, keep_ref, condv_ref, noise_ref, temb_ref,
                     w1_ref, w2_ref, b2_ref, coef_ref, out_x_ref,
                     *, n_timesteps: int, unroll):
    """One batch-block (M = B_blk*H rows): run all n reverse-diffusion steps.

    Shapes (per program):
      x_init_ref : (M, T)        initial gaussian trajectories (flattened batch-block)
      keep_ref   : (M, T)        1.0 where x is kept, 0.0 where conditioned
      condv_ref  : (M, T)        conditioning values (cond_state at row 0 of each traj)
      noise_ref  : (n, M, T)     per-step 0.5*randn noise (resident in VMEM)
      temb_ref   : (n, 1, Hd)    precomputed temb @ wt + b1  (f32)
      w1_ref     : (T, Hd) bf16, w2_ref : (Hd, T) bf16, b2_ref : (1, T) f32
      coef_ref   : (3*n,) SMEM   flat [a_0..a_{n-1}, b_0.., sigma_0..] (time-reversed)
      out_x_ref  : (M, T)
    """
    keep = keep_ref[...]
    condv = condv_ref[...]
    w1 = w1_ref[...]                      # bf16
    w2 = w2_ref[...]                      # bf16
    b2 = b2_ref[...]                      # f32
    n = n_timesteps

    # apply_conditioning(x) == x * keep + condv
    x0 = x_init_ref[...] * keep + condv

    def body(step, x):
        # epsilon model: per-row MLP with precomputed time-embedding projection.
        # bf16 MXU operands, f32 accumulation; element-wise math stays f32.
        h = jnp.dot(x.astype(jnp.bfloat16), w1,
                    preferred_element_type=jnp.float32)               # (M, Hd)
        h = jnp.maximum(h + temb_ref[step], 0.0)                      # + (1, Hd)
        eps = jnp.dot(h.astype(jnp.bfloat16), w2,
                      preferred_element_type=jnp.float32) + b2        # (M, T)

        # fused per-step scalars (flat SMEM reads):
        #   a = c1*sqrt_recip_acp + c2,  b = c1*sqrt_recipm1_acp,
        #   sigma = nonzero_mask * exp(0.5 * posterior_log_variance)
        a = coef_ref[step]
        bc = coef_ref[n + step]
        sg = coef_ref[2 * n + step]

        x_new = a * x - bc * eps + sg * noise_ref[step]
        # TODO(synk): at realistic horizons (H >= 128) replace this full-tile
        # mask re-apply with a row-0-only dynamic update to save 2*M*T VALU
        # lanes per step; negligible at these shapes.
        return x_new * keep + condv

    out_x_ref[...] = lax.fori_loop(0, n, body, x0, unroll=unroll)


# ------------------------------- module wrapper -------------------------------

class GaussianDiffusionPallas:

    def __init__(self, horizon, obs_dim, action_dim, n_timesteps,
                 hidden_dim=32, time_emb_dim=16, seed=0):
        self.horizon = horizon
        self.obs_dim = obs_dim
        self.action_dim = action_dim
        self.transition_dim = obs_dim + action_dim
        self.n_timesteps = int(n_timesteps)
        self.hidden_dim = hidden_dim
        self.time_emb_dim = time_emb_dim

        # diffusion buffers (exactly as in the PyTorch __init__)
        betas = cosine_beta_schedule(n_timesteps).astype(np.float64)
        alphas = 1.0 - betas
        acp = np.cumprod(alphas)
        acp_prev = np.concatenate([np.ones(1), acp[:-1]])
        self.sqrt_recip_alphas_cumprod = np.sqrt(1.0 / acp)
        self.sqrt_recipm1_alphas_cumprod = np.sqrt(1.0 / acp - 1.0)
        post_var = betas * (1.0 - acp_prev) / (1.0 - acp)
        self.posterior_log_variance_clipped = np.log(np.clip(post_var, 1e-20, None))
        self.posterior_mean_coef1 = betas * np.sqrt(acp_prev) / (1.0 - acp)
        self.posterior_mean_coef2 = (1.0 - acp_prev) * np.sqrt(alphas) / (1.0 - acp)

        # deterministic inner-model weights (MXU operands kept in bf16)
        k = jax.random.PRNGKey(seed)
        k1, k2, k3 = jax.random.split(k, 3)
        T, Hd, E = self.transition_dim, hidden_dim, time_emb_dim
        w1 = 0.1 * jax.random.normal(k1, (T, Hd), jnp.float32)
        self.wt = 0.1 * jax.random.normal(k2, (E, Hd), jnp.float32)
        self.b1 = jnp.zeros((1, Hd), jnp.float32)
        w2 = 0.1 * jax.random.normal(k3, (Hd, T), jnp.float32)
        self.b2 = jnp.zeros((1, T), jnp.float32)
        self.w1_bf16 = w1.astype(jnp.bfloat16)
        self.w2_bf16 = w2.astype(jnp.bfloat16)

        # ---- host-side folded per-step tables, reversed time (step i -> t=n-1-i)
        n = self.n_timesteps
        t_rev = np.arange(n - 1, -1, -1)
        sra = self.sqrt_recip_alphas_cumprod[t_rev]
        srm1 = self.sqrt_recipm1_alphas_cumprod[t_rev]
        c1 = self.posterior_mean_coef1[t_rev]
        c2 = self.posterior_mean_coef2[t_rev]
        plv = self.posterior_log_variance_clipped[t_rev]
        nz = (t_rev != 0).astype(np.float64)
        coefs_flat = np.concatenate([c1 * sra + c2,           # a
                                     c1 * srm1,               # b
                                     nz * np.exp(0.5 * plv)   # sigma
                                     ]).astype(np.float32)    # (3*n,)
        self.coefs_flat = jnp.asarray(coefs_flat)

        # precomputed time-embedding projection: temb @ wt + b1  -> (n, 1, Hd)
        self.temb_raw = jnp.asarray(sinusoidal_emb(t_rev, E))   # (n, E)
        temb_proj = (jnp.dot(self.temb_raw, self.wt,
                             precision=lax.Precision.HIGHEST) + self.b1)
        self.temb_proj = temb_proj.reshape(n, 1, Hd).astype(jnp.float32)

        # batch-independent conditioning keep-mask (H, T)
        keep = np.ones((horizon, self.transition_dim), np.float32)
        keep[0, action_dim:] = 0.0
        self.keep = jnp.asarray(keep)

    # ------------------------------------------------------------ batch blocking
    @staticmethod
    def _pick_batch_block(B, H, target_m=256):
        """Largest divisor of B with B_blk * H <= target_m (MXU M fill)."""
        cap = max(1, target_m // max(H, 1))
        best = 1
        for cand in range(1, B + 1):
            if B % cand == 0 and cand <= cap:
                best = cand
        return best

    # ------------------------------------------------------------------ forward
    def forward(self, cond_state, rng):
        """cond_state: (B, obs_dim) -- conditions dict {0: state}; plan_size=1."""
        B = cond_state.shape[0]
        H, T, A = self.horizon, self.transition_dim, self.action_dim
        n, Hd = self.n_timesteps, self.hidden_dim

        B_blk = self._pick_batch_block(B, H)
        G = B // B_blk          # number of programs (batch groups)
        M = B_blk * H           # rows per program

        k_init, k_noise = jax.random.split(rng)
        x_init = jax.random.normal(k_init, (B, H, T), jnp.float32)
        noises = 0.5 * jax.random.normal(k_noise, (n, B, H, T), jnp.float32)

        # conditioning values tensor (zeros except row 0, cols >= action_dim)
        condv = jnp.zeros((B, H, T), jnp.float32).at[:, 0, A:].set(
            cond_state.astype(jnp.float32))

        # layout-preserving reshapes only (no transpose / extra HBM copy)
        x_init_g = x_init.reshape(G, M, T)
        condv_g = condv.reshape(G, M, T)
        noises_g = noises.reshape(n, G, M, T)
        keep_g = jnp.tile(self.keep, (B_blk, 1))                 # (M, T)

        unroll = True if n <= 16 else 8
        kernel = functools.partial(diffusion_kernel, n_timesteps=n, unroll=unroll)

        # per-program VMEM footprint (double-buffered resident noise slab etc.)
        block_bytes = 4 * (n * M * T          # noise
                           + 4 * M * T        # x_init, keep, condv, out
                           + n * Hd + T)      # temb, b2
        block_bytes += 2 * 2 * T * Hd          # bf16 weights
        vmem_limit = int(min(64 << 20, max(32 << 20, 2 * block_bytes + (4 << 20))))

        grid_spec = pltpu.PrefetchScalarGridSpec(
            num_scalar_prefetch=0,
            grid=(G,),                                   # batch groups; time loop in-kernel
            in_specs=[
                pl.BlockSpec((None, M, T), lambda g: (g, 0, 0)),        # x_init
                pl.BlockSpec((M, T), lambda g: (0, 0)),                 # keep mask
                pl.BlockSpec((None, M, T), lambda g: (g, 0, 0)),        # cond values
                pl.BlockSpec((n, None, M, T), lambda g: (0, g, 0, 0)),  # noise (all steps)
                pl.BlockSpec((n, 1, Hd), lambda g: (0, 0, 0)),          # temb @ wt + b1
                pl.BlockSpec((T, Hd), lambda g: (0, 0)),                # w1 (bf16)
                pl.BlockSpec((Hd, T), lambda g: (0, 0)),                # w2 (bf16)
                pl.BlockSpec((1, T), lambda g: (0, 0)),                 # b2
                pl.BlockSpec((3 * n,), lambda g: (0,),
                             memory_space=pltpu.MemorySpace.SMEM),      # fused coefs (flat)
            ],
            out_specs=pl.BlockSpec((None, M, T), lambda g: (g, 0, 0)),
        )

        traj = pl.pallas_call(
            kernel,
            out_shape=jax.ShapeDtypeStruct((G, M, T), jnp.float32),
            grid_spec=grid_spec,
            compiler_params=pltpu.CompilerParams(
                dimension_semantics=("parallel",),       # batch groups across TCs on v7x
                vmem_limit_bytes=vmem_limit),
        )(x_init_g, keep_g, condv_g, noises_g, self.temb_proj,
          self.w1_bf16, self.w2_bf16, self.b2, self.coefs_flat)

        traj = traj.reshape(B, H, T)

        # Sample namedtuple semantics with plan_size=1, return_chain=False.
        # default_sample_fn's `values` are identically zero -> computed on host.
        trajectories = traj.reshape(B, 1, H, T)
        values = jnp.zeros((B, 1), jnp.float32)
        chains = None
        return trajectories, values, chains, (x_init, noises)

    # ------------------------------------------------------- pure-JAX reference
    def reference(self, cond_state, x_init, noises):
        B, H, T = x_init.shape
        A, n = self.action_dim, self.n_timesteps
        # same bf16-rounded weight values as the kernel, but HIGHEST-precision math
        w1 = self.w1_bf16.astype(jnp.float32)
        w2 = self.w2_bf16.astype(jnp.float32)

        def apply_cond(x):
            return x.at[:, 0, A:].set(cond_state)

        x = apply_cond(x_init)
        for i in range(n):
            t = n - 1 - i
            temb = self.temb_raw[i]                          # (E,)
            xf = x.reshape(-1, T)
            h = jnp.maximum(
                jnp.dot(xf, w1, precision=lax.Precision.HIGHEST)
                + jnp.dot(temb, self.wt, precision=lax.Precision.HIGHEST)
                + self.b1, 0.0)
            eps = (jnp.dot(h, w2, precision=lax.Precision.HIGHEST)
                   + self.b2).reshape(B, H, T)
            x_recon = (self.sqrt_recip_alphas_cumprod[t] * x
                       - self.sqrt_recipm1_alphas_cumprod[t] * eps)
            mean = (self.posterior_mean_coef1[t] * x_recon
                    + self.posterior_mean_coef2[t] * x)
            nz = 0.0 if t == 0 else 1.0
            x = mean + nz * np.exp(0.5 * self.posterior_log_variance_clipped[t]) * noises[i]
            x = apply_cond(x)
        return x.astype(jnp.float32)


# ----------------------------------- main -------------------------------------

if __name__ == "__main__":
    B = 2
    horizon = 8
    obs_dim = 6
    action_dim = 2
    n_timesteps = 8

    model = GaussianDiffusionPallas(
        horizon=horizon, obs_dim=obs_dim, action_dim=action_dim,
        n_timesteps=n_timesteps, hidden_dim=32, time_emb_dim=16, seed=0)

    key = jax.random.PRNGKey(0)
    k_cond, k_run = jax.random.split(key)
    cond_state = jax.random.normal(k_cond, (B, obs_dim), jnp.float32)  # cond = {0: state}

    trajectories, values, chains, (x_init, noises) = model.forward(cond_state, k_run)
    jax.block_until_ready((trajectories, values))

    ref = model.reference(cond_state, x_init, noises)
    out = trajectories.reshape(B, horizon, obs_dim + action_dim)
    # tolerance covers bf16 MXU operands in-kernel vs f32 HIGHEST reference
    rel_err = float(jnp.linalg.norm(out - ref) / (jnp.linalg.norm(ref) + 1e-6))
    assert rel_err < 2e-2, f"mismatch vs reference, rel_err={rel_err}"
    assert values.shape == (B, 1) and float(jnp.abs(values).max()) == 0.0

    print("KERNEL_OK")
</pallas_src>

<mosaic_0001>
module attributes {stable_mosaic.version = 11 : i64} {
  func.func @diffusion_kernel(%arg0: i32, %arg1: memref<1x16x8xf32, #tpu.memory_space<vmem>>, %arg2: memref<16x8xf32, #tpu.memory_space<vmem>>, %arg3: memref<1x16x8xf32, #tpu.memory_space<vmem>>, %arg4: memref<8x1x16x8xf32, #tpu.memory_space<vmem>>, %arg5: memref<8x1x32xf32, #tpu.memory_space<vmem>>, %arg6: memref<8x32xbf16, #tpu.memory_space<vmem>>, %arg7: memref<32x8xbf16, #tpu.memory_space<vmem>>, %arg8: memref<1x8xf32, #tpu.memory_space<vmem>>, %arg9: memref<24xf32, #tpu.memory_space<smem>>, %arg10: memref<1x16x8xf32, #tpu.memory_space<vmem>>) attributes {dimension_semantics = [#tpu.dimension_semantics<parallel>], iteration_bounds = array<i64: 1>, scalar_prefetch = 0 : i64, scratch_operands = 0 : i64, tpu.core_type = #tpu.core_type<tc>, window_params = [{transform_indices = @transform_0, window_bounds = array<i64: 1, 16, 8>}, {pipeline_mode = #tpu.pipeline_mode<synchronous>, transform_indices = @transform_1, window_bounds = array<i64: 16, 8>}, {transform_indices = @transform_2, window_bounds = array<i64: 1, 16, 8>}, {transform_indices = @transform_3, window_bounds = array<i64: 8, 1, 16, 8>}, {pipeline_mode = #tpu.pipeline_mode<synchronous>, transform_indices = @transform_4, window_bounds = array<i64: 8, 1, 32>}, {pipeline_mode = #tpu.pipeline_mode<synchronous>, transform_indices = @transform_5, window_bounds = array<i64: 8, 32>}, {pipeline_mode = #tpu.pipeline_mode<synchronous>, transform_indices = @transform_6, window_bounds = array<i64: 32, 8>}, {pipeline_mode = #tpu.pipeline_mode<synchronous>, transform_indices = @transform_7, window_bounds = array<i64: 1, 8>}, {transform_indices = @transform_8, window_bounds = array<i64: 24>}, {transform_indices = @transform_9, window_bounds = array<i64: 1, 16, 8>}]} {
    %c0 = arith.constant 0 : index
    %c0_0 = arith.constant 0 : index
    %0 = vector.load %arg2[%c0, %c0_0] : memref<16x8xf32, #tpu.memory_space<vmem>>, vector<16x8xf32>
    %c0_1 = arith.constant 0 : index
    %c0_2 = arith.constant 0 : index
    %c0_3 = arith.constant 0 : index
    %1 = vector.load %arg3[%c0_1, %c0_2, %c0_3] : memref<1x16x8xf32, #tpu.memory_space<vmem>>, vector<1x16x8xf32>
    %2 = vector.shape_cast %1 : vector<1x16x8xf32> to vector<16x8xf32>
    %c0_4 = arith.constant 0 : index
    %c0_5 = arith.constant 0 : index
    %3 = vector.load %arg6[%c0_4, %c0_5] : memref<8x32xbf16, #tpu.memory_space<vmem>>, vector<8x32xbf16>
    %c0_6 = arith.constant 0 : index
    %c0_7 = arith.constant 0 : index
    %4 = vector.load %arg7[%c0_6, %c0_7] : memref<32x8xbf16, #tpu.memory_space<vmem>>, vector<32x8xbf16>
    %c0_8 = arith.constant 0 : index
    %c0_9 = arith.constant 0 : index
    %5 = vector.load %arg8[%c0_8, %c0_9] : memref<1x8xf32, #tpu.memory_space<vmem>>, vector<1x8xf32>
    %c0_10 = arith.constant 0 : index
    %c0_11 = arith.constant 0 : index
    %c0_12 = arith.constant 0 : index
    %6 = vector.load %arg1[%c0_10, %c0_11, %c0_12] : memref<1x16x8xf32, #tpu.memory_space<vmem>>, vector<1x16x8xf32>
    %7 = vector.shape_cast %6 : vector<1x16x8xf32> to vector<16x8xf32>
    %8 = arith.mulf %7, %0 : vector<16x8xf32>
    %9 = arith.addf %8, %2 : vector<16x8xf32>
    %c0_i32 = arith.constant 0 : i32
    %10 = arith.truncf %9 : vector<16x8xf32> to vector<16x8xbf16>
    %cst = arith.constant dense<0.000000e+00> : vector<16x32xf32>
    %11 = tpu.matmul %10, %3, %cst {dimension_numbers = #tpu.dot_dimension_numbers<[1], [0], [0], [1], [0, 0, 1, 1], [], []>} : vector<16x8xbf16>, vector<8x32xbf16>, vector<16x32xf32> -> vector<16x32xf32>
    %12 = arith.index_cast %c0_i32 : i32 to index
    %c0_13 = arith.constant 0 : index
    %c0_14 = arith.constant 0 : index
    %13 = vector.load %arg5[%12, %c0_13, %c0_14] : memref<8x1x32xf32, #tpu.memory_space<vmem>>, vector<1x1x32xf32>
    %14 = vector.shape_cast %13 : vector<1x1x32xf32> to vector<1x32xf32>
    %15 = vector.broadcast %14 : vector<1x32xf32> to vector<16x32xf32>
    %16 = arith.addf %11, %15 : vector<16x32xf32>
    %cst_15 = arith.constant 0.000000e+00 : f32
    %17 = vector.broadcast %cst_15 : f32 to vector<16x32xf32>
    %18 = arith.maximumf %16, %17 : vector<16x32xf32>
    %19 = arith.truncf %18 : vector<16x32xf32> to vector<16x32xbf16>
    %cst_16 = arith.constant dense<0.000000e+00> : vector<16x8xf32>
    %20 = tpu.matmul %19, %4, %cst_16 {dimension_numbers = #tpu.dot_dimension_numbers<[1], [0], [0], [1], [0, 0, 1, 1], [], []>} : vector<16x32xbf16>, vector<32x8xbf16>, vector<16x8xf32> -> vector<16x8xf32>
    %21 = vector.broadcast %5 : vector<1x8xf32> to vector<16x8xf32>
    %22 = arith.addf %20, %21 : vector<16x8xf32>
    %23 = arith.index_cast %c0_i32 : i32 to index
    %24 = memref.load %arg9[%23] : memref<24xf32, #tpu.memory_space<smem>>
    %c8_i32 = arith.constant 8 : i32
    %25 = arith.addi %c8_i32, %c0_i32 : i32
    %26 = arith.index_cast %25 : i32 to index
    %27 = memref.load %arg9[%26] : memref<24xf32, #tpu.memory_space<smem>>
    %c16_i32 = arith.constant 16 : i32
    %28 = arith.addi %c16_i32, %c0_i32 : i32
    %29 = arith.index_cast %28 : i32 to index
    %30 = memref.load %arg9[%29] : memref<24xf32, #tpu.memory_space<smem>>
    %31 = vector.broadcast %24 : f32 to vector<16x8xf32>
    %32 = arith.mulf %31, %9 : vector<16x8xf32>
    %33 = vector.broadcast %27 : f32 to vector<16x8xf32>
    %34 = arith.mulf %33, %22 : vector<16x8xf32>
    %35 = arith.subf %32, %34 : vector<16x8xf32>
    %36 = arith.index_cast %c0_i32 : i32 to index
    %c0_17 = arith.constant 0 : index
    %c0_18 = arith.constant 0 : index
    %c0_19 = arith.constant 0 : index
    %37 = vector.load %arg4[%36, %c0_17, %c0_18, %c0_19] : memref<8x1x16x8xf32, #tpu.memory_space<vmem>>, vector<1x1x16x8xf32>
    %38 = vector.shape_cast %37 : vector<1x1x16x8xf32> to vector<16x8xf32>
    %39 = vector.broadcast %30 : f32 to vector<16x8xf32>
    %40 = arith.mulf %39, %38 : vector<16x8xf32>
    %41 = arith.addf %35, %40 : vector<16x8xf32>
    %42 = arith.mulf %41, %0 : vector<16x8xf32>
    %43 = arith.addf %42, %2 : vector<16x8xf32>
    %c1_i32 = arith.constant 1 : i32
    %44 = arith.truncf %43 : vector<16x8xf32> to vector<16x8xbf16>
    %cst_20 = arith.constant dense<0.000000e+00> : vector<16x32xf32>
    %45 = tpu.matmul %44, %3, %cst_20 {dimension_numbers = #tpu.dot_dimension_numbers<[1], [0], [0], [1], [0, 0, 1, 1], [], []>} : vector<16x8xbf16>, vector<8x32xbf16>, vector<16x32xf32> -> vector<16x32xf32>
    %46 = arith.index_cast %c1_i32 : i32 to index
    %c0_21 = arith.constant 0 : index
    %c0_22 = arith.constant 0 : index
    %47 = vector.load %arg5[%46, %c0_21, %c0_22] : memref<8x1x32xf32, #tpu.memory_space<vmem>>, vector<1x1x32xf32>
    %48 = vector.shape_cast %47 : vector<1x1x32xf32> to vector<1x32xf32>
    %49 = vector.broadcast %48 : vector<1x32xf32> to vector<16x32xf32>
    %50 = arith.addf %45, %49 : vector<16x32xf32>
    %cst_23 = arith.constant 0.000000e+00 : f32
    %51 = vector.broadcast %cst_23 : f32 to vector<16x32xf32>
    %52 = arith.maximumf %50, %51 : vector<16x32xf32>
    %53 = arith.truncf %52 : vector<16x32xf32> to vector<16x32xbf16>
    %cst_24 = arith.constant dense<0.000000e+00> : vector<16x8xf32>
    %54 = tpu.matmul %53, %4, %cst_24 {dimension_numbers = #tpu.dot_dimension_numbers<[1], [0], [0], [1], [0, 0, 1, 1], [], []>} : vector<16x32xbf16>, vector<32x8xbf16>, vector<16x8xf32> -> vector<16x8xf32>
    %55 = vector.broadcast %5 : vector<1x8xf32> to vector<16x8xf32>
    %56 = arith.addf %54, %55 : vector<16x8xf32>
    %57 = arith.index_cast %c1_i32 : i32 to index
    %58 = memref.load %arg9[%57] : memref<24xf32, #tpu.memory_space<smem>>
    %c8_i32_25 = arith.constant 8 : i32
    %59 = arith.addi %c8_i32_25, %c1_i32 : i32
    %60 = arith.index_cast %59 : i32 to index
    %61 = memref.load %arg9[%60] : memref<24xf32, #tpu.memory_space<smem>>
    %c16_i32_26 = arith.constant 16 : i32
    %62 = arith.addi %c16_i32_26, %c1_i32 : i32
    %63 = arith.index_cast %62 : i32 to index
    %64 = memref.load %arg9[%63] : memref<24xf32, #tpu.memory_space<smem>>
    %65 = vector.broadcast %58 : f32 to vector<16x8xf32>
    %66 = arith.mulf %65, %43 : vector<16x8xf32>
    %67 = vector.broadcast %61 : f32 to vector<16x8xf32>
    %68 = arith.mulf %67, %56 : vector<16x8xf32>
    %69 = arith.subf %66, %68 : vector<16x8xf32>
    %70 = arith.index_cast %c1_i32 : i32 to index
    %c0_27 = arith.constant 0 : index
    %c0_28 = arith.constant 0 : index
    %c0_29 = arith.constant 0 : index
    %71 = vector.load %arg4[%70, %c0_27, %c0_28, %c0_29] : memref<8x1x16x8xf32, #tpu.memory_space<vmem>>, vector<1x1x16x8xf32>
    %72 = vector.shape_cast %71 : vector<1x1x16x8xf32> to vector<16x8xf32>
    %73 = vector.broadcast %64 : f32 to vector<16x8xf32>
    %74 = arith.mulf %73, %72 : vector<16x8xf32>
    %75 = arith.addf %69, %74 : vector<16x8xf32>
    %76 = arith.mulf %75, %0 : vector<16x8xf32>
    %77 = arith.addf %76, %2 : vector<16x8xf32>
    %c2_i32 = arith.constant 2 : i32
    %78 = arith.truncf %77 : vector<16x8xf32> to vector<16x8xbf16>
    %cst_30 = arith.constant dense<0.000000e+00> : vector<16x32xf32>
    %79 = tpu.matmul %78, %3, %cst_30 {dimension_numbers = #tpu.dot_dimension_numbers<[1], [0], [0], [1], [0, 0, 1, 1], [], []>} : vector<16x8xbf16>, vector<8x32xbf16>, vector<16x32xf32> -> vector<16x32xf32>
    %80 = arith.index_cast %c2_i32 : i32 to index
    %c0_31 = arith.constant 0 : index
    %c0_32 = arith.constant 0 : index
    %81 = vector.load %arg5[%80, %c0_31, %c0_32] : memref<8x1x32xf32, #tpu.memory_space<vmem>>, vector<1x1x32xf32>
    %82 = vector.shape_cast %81 : vector<1x1x32xf32> to vector<1x32xf32>
    %83 = vector.broadcast %82 : vector<1x32xf32> to vector<16x32xf32>
    %84 = arith.addf %79, %83 : vector<16x32xf32>
    %cst_33 = arith.constant 0.000000e+00 : f32
    %85 = vector.broadcast %cst_33 : f32 to vector<16x32xf32>
    %86 = arith.maximumf %84, %85 : vector<16x32xf32>
    %87 = arith.truncf %86 : vector<16x32xf32> to vector<16x32xbf16>
    %cst_34 = arith.constant dense<0.000000e+00> : vector<16x8xf32>
    %88 = tpu.matmul %87, %4, %cst_34 {dimension_numbers = #tpu.dot_dimension_numbers<[1], [0], [0], [1], [0, 0, 1, 1], [], []>} : vector<16x32xbf16>, vector<32x8xbf16>, vector<16x8xf32> -> vector<16x8xf32>
    %89 = vector.broadcast %5 : vector<1x8xf32> to vector<16x8xf32>
    %90 = arith.addf %88, %89 : vector<16x8xf32>
    %91 = arith.index_cast %c2_i32 : i32 to index
    %92 = memref.load %arg9[%91] : memref<24xf32, #tpu.memory_space<smem>>
    %c8_i32_35 = arith.constant 8 : i32
    %93 = arith.addi %c8_i32_35, %c2_i32 : i32
    %94 = arith.index_cast %93 : i32 to index
    %95 = memref.load %arg9[%94] : memref<24xf32, #tpu.memory_space<smem>>
    %c16_i32_36 = arith.constant 16 : i32
    %96 = arith.addi %c16_i32_36, %c2_i32 : i32
    %97 = arith.index_cast %96 : i32 to index
    %98 = memref.load %arg9[%97] : memref<24xf32, #tpu.memory_space<smem>>
    %99 = vector.broadcast %92 : f32 to vector<16x8xf32>
    %100 = arith.mulf %99, %77 : vector<16x8xf32>
    %101 = vector.broadcast %95 : f32 to vector<16x8xf32>
    %102 = arith.mulf %101, %90 : vector<16x8xf32>
    %103 = arith.subf %100, %102 : vector<16x8xf32>
    %104 = arith.index_cast %c2_i32 : i32 to index
    %c0_37 = arith.constant 0 : index
    %c0_38 = arith.constant 0 : index
    %c0_39 = arith.constant 0 : index
    %105 = vector.load %arg4[%104, %c0_37, %c0_38, %c0_39] : memref<8x1x16x8xf32, #tpu.memory_space<vmem>>, vector<1x1x16x8xf32>
    %106 = vector.shape_cast %105 : vector<1x1x16x8xf32> to vector<16x8xf32>
    %107 = vector.broadcast %98 : f32 to vector<16x8xf32>
    %108 = arith.mulf %107, %106 : vector<16x8xf32>
    %109 = arith.addf %103, %108 : vector<16x8xf32>
    %110 = arith.mulf %109, %0 : vector<16x8xf32>
    %111 = arith.addf %110, %2 : vector<16x8xf32>
    %c3_i32 = arith.constant 3 : i32
    %112 = arith.truncf %111 : vector<16x8xf32> to vector<16x8xbf16>
    %cst_40 = arith.constant dense<0.000000e+00> : vector<16x32xf32>
    %113 = tpu.matmul %112, %3, %cst_40 {dimension_numbers = #tpu.dot_dimension_numbers<[1], [0], [0], [1], [0, 0, 1, 1], [], []>} : vector<16x8xbf16>, vector<8x32xbf16>, vector<16x32xf32> -> vector<16x32xf32>
    %114 = arith.index_cast %c3_i32 : i32 to index
    %c0_41 = arith.constant 0 : index
    %c0_42 = arith.constant 0 : index
    %115 = vector.load %arg5[%114, %c0_41, %c0_42] : memref<8x1x32xf32, #tpu.memory_space<vmem>>, vector<1x1x32xf32>
    %116 = vector.shape_cast %115 : vector<1x1x32xf32> to vector<1x32xf32>
    %117 = vector.broadcast %116 : vector<1x32xf32> to vector<16x32xf32>
    %118 = arith.addf %113, %117 : vector<16x32xf32>
    %cst_43 = arith.constant 0.000000e+00 : f32
    %119 = vector.broadcast %cst_43 : f32 to vector<16x32xf32>
    %120 = arith.maximumf %118, %119 : vector<16x32xf32>
    %121 = arith.truncf %120 : vector<16x32xf32> to vector<16x32xbf16>
    %cst_44 = arith.constant dense<0.000000e+00> : vector<16x8xf32>
    %122 = tpu.matmul %121, %4, %cst_44 {dimension_numbers = #tpu.dot_dimension_numbers<[1], [0], [0], [1], [0, 0, 1, 1], [], []>} : vector<16x32xbf16>, vector<32x8xbf16>, vector<16x8xf32> -> vector<16x8xf32>
    %123 = vector.broadcast %5 : vector<1x8xf32> to vector<16x8xf32>
    %124 = arith.addf %122, %123 : vector<16x8xf32>
    %125 = arith.index_cast %c3_i32 : i32 to index
    %126 = memref.load %arg9[%125] : memref<24xf32, #tpu.memory_space<smem>>
    %c8_i32_45 = arith.constant 8 : i32
    %127 = arith.addi %c8_i32_45, %c3_i32 : i32
    %128 = arith.index_cast %127 : i32 to index
    %129 = memref.load %arg9[%128] : memref<24xf32, #tpu.memory_space<smem>>
    %c16_i32_46 = arith.constant 16 : i32
    %130 = arith.addi %c16_i32_46, %c3_i32 : i32
    %131 = arith.index_cast %130 : i32 to index
    %132 = memref.load %arg9[%131] : memref<24xf32, #tpu.memory_space<smem>>
    %133 = vector.broadcast %126 : f32 to vector<16x8xf32>
    %134 = arith.mulf %133, %111 : vector<16x8xf32>
    %135 = vector.broadcast %129 : f32 to vector<16x8xf32>
    %136 = arith.mulf %135, %124 : vector<16x8xf32>
    %137 = arith.subf %134, %136 : vector<16x8xf32>
    %138 = arith.index_cast %c3_i32 : i32 to index
    %c0_47 = arith.constant 0 : index
    %c0_48 = arith.constant 0 : index
    %c0_49 = arith.constant 0 : index
    %139 = vector.load %arg4[%138, %c0_47, %c0_48, %c0_49] : memref<8x1x16x8xf32, #tpu.memory_space<vmem>>, vector<1x1x16x8xf32>
    %140 = vector.shape_cast %139 : vector<1x1x16x8xf32> to vector<16x8xf32>
    %141 = vector.broadcast %132 : f32 to vector<16x8xf32>
    %142 = arith.mulf %141, %140 : vector<16x8xf32>
    %143 = arith.addf %137, %142 : vector<16x8xf32>
    %144 = arith.mulf %143, %0 : vector<16x8xf32>
    %145 = arith.addf %144, %2 : vector<16x8xf32>
    %c4_i32 = arith.constant 4 : i32
    %146 = arith.truncf %145 : vector<16x8xf32> to vector<16x8xbf16>
    %cst_50 = arith.constant dense<0.000000e+00> : vector<16x32xf32>
    %147 = tpu.matmul %146, %3, %cst_50 {dimension_numbers = #tpu.dot_dimension_numbers<[1], [0], [0], [1], [0, 0, 1, 1], [], []>} : vector<16x8xbf16>, vector<8x32xbf16>, vector<16x32xf32> -> vector<16x32xf32>
    %148 = arith.index_cast %c4_i32 : i32 to index
    %c0_51 = arith.constant 0 : index
    %c0_52 = arith.constant 0 : index
    %149 = vector.load %arg5[%148, %c0_51, %c0_52] : memref<8x1x32xf32, #tpu.memory_space<vmem>>, vector<1x1x32xf32>
    %150 = vector.shape_cast %149 : vector<1x1x32xf32> to vector<1x32xf32>
    %151 = vector.broadcast %150 : vector<1x32xf32> to vector<16x32xf32>
    %152 = arith.addf %147, %151 : vector<16x32xf32>
    %cst_53 = arith.constant 0.000000e+00 : f32
    %153 = vector.broadcast %cst_53 : f32 to vector<16x32xf32>
    %154 = arith.maximumf %152, %153 : vector<16x32xf32>
    %155 = arith.truncf %154 : vector<16x32xf32> to vector<16x32xbf16>
    %cst_54 = arith.constant dense<0.000000e+00> : vector<16x8xf32>
    %156 = tpu.matmul %155, %4, %cst_54 {dimension_numbers = #tpu.dot_dimension_numbers<[1], [0], [0], [1], [0, 0, 1, 1], [], []>} : vector<16x32xbf16>, vector<32x8xbf16>, vector<16x8xf32> -> vector<16x8xf32>
    %157 = vector.broadcast %5 : vector<1x8xf32> to vector<16x8xf32>
    %158 = arith.addf %156, %157 : vector<16x8xf32>
    %159 = arith.index_cast %c4_i32 : i32 to index
    %160 = memref.load %arg9[%159] : memref<24xf32, #tpu.memory_space<smem>>
    %c8_i32_55 = arith.constant 8 : i32
    %161 = arith.addi %c8_i32_55, %c4_i32 : i32
    %162 = arith.index_cast %161 : i32 to index
    %163 = memref.load %arg9[%162] : memref<24xf32, #tpu.memory_space<smem>>
    %c16_i32_56 = arith.constant 16 : i32
    %164 = arith.addi %c16_i32_56, %c4_i32 : i32
    %165 = arith.index_cast %164 : i32 to index
    %166 = memref.load %arg9[%165] : memref<24xf32, #tpu.memory_space<smem>>
    %167 = vector.broadcast %160 : f32 to vector<16x8xf32>
    %168 = arith.mulf %167, %145 : vector<16x8xf32>
    %169 = vector.broadcast %163 : f32 to vector<16x8xf32>
    %170 = arith.mulf %169, %158 : vector<16x8xf32>
    %171 = arith.subf %168, %170 : vector<16x8xf32>
    %172 = arith.index_cast %c4_i32 : i32 to index
    %c0_57 = arith.constant 0 : index
    %c0_58 = arith.constant 0 : index
    %c0_59 = arith.constant 0 : index
    %173 = vector.load %arg4[%172, %c0_57, %c0_58, %c0_59] : memref<8x1x16x8xf32, #tpu.memory_space<vmem>>, vector<1x1x16x8xf32>
    %174 = vector.shape_cast %173 : vector<1x1x16x8xf32> to vector<16x8xf32>
    %175 = vector.broadcast %166 : f32 to vector<16x8xf32>
    %176 = arith.mulf %175, %174 : vector<16x8xf32>
    %177 = arith.addf %171, %176 : vector<16x8xf32>
    %178 = arith.mulf %177, %0 : vector<16x8xf32>
    %179 = arith.addf %178, %2 : vector<16x8xf32>
    %c5_i32 = arith.constant 5 : i32
    %180 = arith.truncf %179 : vector<16x8xf32> to vector<16x8xbf16>
    %cst_60 = arith.constant dense<0.000000e+00> : vector<16x32xf32>
    %181 = tpu.matmul %180, %3, %cst_60 {dimension_numbers = #tpu.dot_dimension_numbers<[1], [0], [0], [1], [0, 0, 1, 1], [], []>} : vector<16x8xbf16>, vector<8x32xbf16>, vector<16x32xf32> -> vector<16x32xf32>
    %182 = arith.index_cast %c5_i32 : i32 to index
    %c0_61 = arith.constant 0 : index
    %c0_62 = arith.constant 0 : index
    %183 = vector.load %arg5[%182, %c0_61, %c0_62] : memref<8x1x32xf32, #tpu.memory_space<vmem>>, vector<1x1x32xf32>
    %184 = vector.shape_cast %183 : vector<1x1x32xf32> to vector<1x32xf32>
    %185 = vector.broadcast %184 : vector<1x32xf32> to vector<16x32xf32>
    %186 = arith.addf %181, %185 : vector<16x32xf32>
    %cst_63 = arith.constant 0.000000e+00 : f32
    %187 = vector.broadcast %cst_63 : f32 to vector<16x32xf32>
    %188 = arith.maximumf %186, %187 : vector<16x32xf32>
    %189 = arith.truncf %188 : vector<16x32xf32> to vector<16x32xbf16>
    %cst_64 = arith.constant dense<0.000000e+00> : vector<16x8xf32>
    %190 = tpu.matmul %189, %4, %cst_64 {dimension_numbers = #tpu.dot_dimension_numbers<[1], [0], [0], [1], [0, 0, 1, 1], [], []>} : vector<16x32xbf16>, vector<32x8xbf16>, vector<16x8xf32> -> vector<16x8xf32>
    %191 = vector.broadcast %5 : vector<1x8xf32> to vector<16x8xf32>
    %192 = arith.addf %190, %191 : vector<16x8xf32>
    %193 = arith.index_cast %c5_i32 : i32 to index
    %194 = memref.load %arg9[%193] : memref<24xf32, #tpu.memory_space<smem>>
    %c8_i32_65 = arith.constant 8 : i32
    %195 = arith.addi %c8_i32_65, %c5_i32 : i32
    %196 = arith.index_cast %195 : i32 to index
    %197 = memref.load %arg9[%196] : memref<24xf32, #tpu.memory_space<smem>>
    %c16_i32_66 = arith.constant 16 : i32
    %198 = arith.addi %c16_i32_66, %c5_i32 : i32
    %199 = arith.index_cast %198 : i32 to index
    %200 = memref.load %arg9[%199] : memref<24xf32, #tpu.memory_space<smem>>
    %201 = vector.broadcast %194 : f32 to vector<16x8xf32>
    %202 = arith.mulf %201, %179 : vector<16x8xf32>
    %203 = vector.broadcast %197 : f32 to vector<16x8xf32>
    %204 = arith.mulf %203, %192 : vector<16x8xf32>
    %205 = arith.subf %202, %204 : vector<16x8xf32>
    %206 = arith.index_cast %c5_i32 : i32 to index
    %c0_67 = arith.constant 0 : index
    %c0_68 = arith.constant 0 : index
    %c0_69 = arith.constant 0 : index
    %207 = vector.load %arg4[%206, %c0_67, %c0_68, %c0_69] : memref<8x1x16x8xf32, #tpu.memory_space<vmem>>, vector<1x1x16x8xf32>
    %208 = vector.shape_cast %207 : vector<1x1x16x8xf32> to vector<16x8xf32>
    %209 = vector.broadcast %200 : f32 to vector<16x8xf32>
    %210 = arith.mulf %209, %208 : vector<16x8xf32>
    %211 = arith.addf %205, %210 : vector<16x8xf32>
    %212 = arith.mulf %211, %0 : vector<16x8xf32>
    %213 = arith.addf %212, %2 : vector<16x8xf32>
    %c6_i32 = arith.constant 6 : i32
    %214 = arith.truncf %213 : vector<16x8xf32> to vector<16x8xbf16>
    %cst_70 = arith.constant dense<0.000000e+00> : vector<16x32xf32>
    %215 = tpu.matmul %214, %3, %cst_70 {dimension_numbers = #tpu.dot_dimension_numbers<[1], [0], [0], [1], [0, 0, 1, 1], [], []>} : vector<16x8xbf16>, vector<8x32xbf16>, vector<16x32xf32> -> vector<16x32xf32>
    %216 = arith.index_cast %c6_i32 : i32 to index
    %c0_71 = arith.constant 0 : index
    %c0_72 = arith.constant 0 : index
    %217 = vector.load %arg5[%216, %c0_71, %c0_72] : memref<8x1x32xf32, #tpu.memory_space<vmem>>, vector<1x1x32xf32>
    %218 = vector.shape_cast %217 : vector<1x1x32xf32> to vector<1x32xf32>
    %219 = vector.broadcast %218 : vector<1x32xf32> to vector<16x32xf32>
    %220 = arith.addf %215, %219 : vector<16x32xf32>
    %cst_73 = arith.constant 0.000000e+00 : f32
    %221 = vector.broadcast %cst_73 : f32 to vector<16x32xf32>
    %222 = arith.maximumf %220, %221 : vector<16x32xf32>
    %223 = arith.truncf %222 : vector<16x32xf32> to vector<16x32xbf16>
    %cst_74 = arith.constant dense<0.000000e+00> : vector<16x8xf32>
    %224 = tpu.matmul %223, %4, %cst_74 {dimension_numbers = #tpu.dot_dimension_numbers<[1], [0], [0], [1], [0, 0, 1, 1], [], []>} : vector<16x32xbf16>, vector<32x8xbf16>, vector<16x8xf32> -> vector<16x8xf32>
    %225 = vector.broadcast %5 : vector<1x8xf32> to vector<16x8xf32>
    %226 = arith.addf %224, %225 : vector<16x8xf32>
    %227 = arith.index_cast %c6_i32 : i32 to index
    %228 = memref.load %arg9[%227] : memref<24xf32, #tpu.memory_space<smem>>
    %c8_i32_75 = arith.constant 8 : i32
    %229 = arith.addi %c8_i32_75, %c6_i32 : i32
    %230 = arith.index_cast %229 : i32 to index
    %231 = memref.load %arg9[%230] : memref<24xf32, #tpu.memory_space<smem>>
    %c16_i32_76 = arith.constant 16 : i32
    %232 = arith.addi %c16_i32_76, %c6_i32 : i32
    %233 = arith.index_cast %232 : i32 to index
    %234 = memref.load %arg9[%233] : memref<24xf32, #tpu.memory_space<smem>>
    %235 = vector.broadcast %228 : f32 to vector<16x8xf32>
    %236 = arith.mulf %235, %213 : vector<16x8xf32>
    %237 = vector.broadcast %231 : f32 to vector<16x8xf32>
    %238 = arith.mulf %237, %226 : vector<16x8xf32>
    %239 = arith.subf %236, %238 : vector<16x8xf32>
    %240 = arith.index_cast %c6_i32 : i32 to index
    %c0_77 = arith.constant 0 : index
    %c0_78 = arith.constant 0 : index
    %c0_79 = arith.constant 0 : index
    %241 = vector.load %arg4[%240, %c0_77, %c0_78, %c0_79] : memref<8x1x16x8xf32, #tpu.memory_space<vmem>>, vector<1x1x16x8xf32>
    %242 = vector.shape_cast %241 : vector<1x1x16x8xf32> to vector<16x8xf32>
    %243 = vector.broadcast %234 : f32 to vector<16x8xf32>
    %244 = arith.mulf %243, %242 : vector<16x8xf32>
    %245 = arith.addf %239, %244 : vector<16x8xf32>
    %246 = arith.mulf %245, %0 : vector<16x8xf32>
    %247 = arith.addf %246, %2 : vector<16x8xf32>
    %c7_i32 = arith.constant 7 : i32
    %248 = arith.truncf %247 : vector<16x8xf32> to vector<16x8xbf16>
    %cst_80 = arith.constant dense<0.000000e+00> : vector<16x32xf32>
    %249 = tpu.matmul %248, %3, %cst_80 {dimension_numbers = #tpu.dot_dimension_numbers<[1], [0], [0], [1], [0, 0, 1, 1], [], []>} : vector<16x8xbf16>, vector<8x32xbf16>, vector<16x32xf32> -> vector<16x32xf32>
    %250 = arith.index_cast %c7_i32 : i32 to index
    %c0_81 = arith.constant 0 : index
    %c0_82 = arith.constant 0 : index
    %251 = vector.load %arg5[%250, %c0_81, %c0_82] : memref<8x1x32xf32, #tpu.memory_space<vmem>>, vector<1x1x32xf32>
    %252 = vector.shape_cast %251 : vector<1x1x32xf32> to vector<1x32xf32>
    %253 = vector.broadcast %252 : vector<1x32xf32> to vector<16x32xf32>
    %254 = arith.addf %249, %253 : vector<16x32xf32>
    %cst_83 = arith.constant 0.000000e+00 : f32
    %255 = vector.broadcast %cst_83 : f32 to vector<16x32xf32>
    %256 = arith.maximumf %254, %255 : vector<16x32xf32>
    %257 = arith.truncf %256 : vector<16x32xf32> to vector<16x32xbf16>
    %cst_84 = arith.constant dense<0.000000e+00> : vector<16x8xf32>
    %258 = tpu.matmul %257, %4, %cst_84 {dimension_numbers = #tpu.dot_dimension_numbers<[1], [0], [0], [1], [0, 0, 1, 1], [], []>} : vector<16x32xbf16>, vector<32x8xbf16>, vector<16x8xf32> -> vector<16x8xf32>
    %259 = vector.broadcast %5 : vector<1x8xf32> to vector<16x8xf32>
    %260 = arith.addf %258, %259 : vector<16x8xf32>
    %261 = arith.index_cast %c7_i32 : i32 to index
    %262 = memref.load %arg9[%261] : memref<24xf32, #tpu.memory_space<smem>>
    %c8_i32_85 = arith.constant 8 : i32
    %263 = arith.addi %c8_i32_85, %c7_i32 : i32
    %264 = arith.index_cast %263 : i32 to index
    %265 = memref.load %arg9[%264] : memref<24xf32, #tpu.memory_space<smem>>
    %c16_i32_86 = arith.constant 16 : i32
    %266 = arith.addi %c16_i32_86, %c7_i32 : i32
    %267 = arith.index_cast %266 : i32 to index
    %268 = memref.load %arg9[%267] : memref<24xf32, #tpu.memory_space<smem>>
    %269 = vector.broadcast %262 : f32 to vector<16x8xf32>
    %270 = arith.mulf %269, %247 : vector<16x8xf32>
    %271 = vector.broadcast %265 : f32 to vector<16x8xf32>
    %272 = arith.mulf %271, %260 : vector<16x8xf32>
    %273 = arith.subf %270, %272 : vector<16x8xf32>
    %274 = arith.index_cast %c7_i32 : i32 to index
    %c0_87 = arith.constant 0 : index
    %c0_88 = arith.constant 0 : index
    %c0_89 = arith.constant 0 : index
    %275 = vector.load %arg4[%274, %c0_87, %c0_88, %c0_89] : memref<8x1x16x8xf32, #tpu.memory_space<vmem>>, vector<1x1x16x8xf32>
    %276 = vector.shape_cast %275 : vector<1x1x16x8xf32> to vector<16x8xf32>
    %277 = vector.broadcast %268 : f32 to vector<16x8xf32>
    %278 = arith.mulf %277, %276 : vector<16x8xf32>
    %279 = arith.addf %273, %278 : vector<16x8xf32>
    %280 = arith.mulf %279, %0 : vector<16x8xf32>
    %281 = arith.addf %280, %2 : vector<16x8xf32>
    %c8_i32_90 = arith.constant 8 : i32
    %c0_91 = arith.constant 0 : index
    %c0_92 = arith.constant 0 : index
    %c0_93 = arith.constant 0 : index
    %282 = vector.load %arg10[%c0_91, %c0_92, %c0_93] : memref<1x16x8xf32, #tpu.memory_space<vmem>>, vector<1x16x8xf32>
    %283 = vector.shape_cast %282 : vector<1x16x8xf32> to vector<16x8xf32>
    %284 = vector.shape_cast %281 : vector<16x8xf32> to vector<1x16x8xf32>
    tpu.vector_store %arg10[%c0_91, %c0_92, %c0_93], %284 {strides = array<i32>} : memref<1x16x8xf32, #tpu.memory_space<vmem>>, vector<1x16x8xf32>,
    return
  }
  func.func @transform_0(%arg0: i32) -> (i32, i32, i32) {
    %c0_i32 = arith.constant 0 : i32
    %c0_i32_0 = arith.constant 0 : i32
    %c0_i32_1 = arith.constant 0 : i32
    return %arg0, %c0_i32, %c0_i32_0 : i32, i32, i32
  }
  func.func @transform_1(%arg0: i32) -> (i32, i32) {
    %c0_i32 = arith.constant 0 : i32
    %c0_i32_0 = arith.constant 0 : i32
    %c0_i32_1 = arith.constant 0 : i32
    return %c0_i32, %c0_i32_0 : i32, i32
  }
  func.func @transform_2(%arg0: i32) -> (i32, i32, i32) {
    %c0_i32 = arith.constant 0 : i32
    %c0_i32_0 = arith.constant 0 : i32
    %c0_i32_1 = arith.constant 0 : i32
    return %arg0, %c0_i32, %c0_i32_0 : i32, i32, i32
  }
  func.func @transform_3(%arg0: i32) -> (i32, i32, i32, i32) {
    %c0_i32 = arith.constant 0 : i32
    %c0_i32_0 = arith.constant 0 : i32
    %c0_i32_1 = arith.constant 0 : i32
    %c0_i32_2 = arith.constant 0 : i32
    return %c0_i32, %arg0, %c0_i32_0, %c0_i32_1 : i32, i32, i32, i32
  }
  func.func @transform_4(%arg0: i32) -> (i32, i32, i32) {
    %c0_i32 = arith.constant 0 : i32
    %c0_i32_0 = arith.constant 0 : i32
    %c0_i32_1 = arith.constant 0 : i32
    %c0_i32_2 = arith.constant 0 : i32
    return %c0_i32, %c0_i32_0, %c0_i32_1 : i32, i32, i32
  }
  func.func @transform_5(%arg0: i32) -> (i32, i32) {
    %c0_i32 = arith.constant 0 : i32
    %c0_i32_0 = arith.constant 0 : i32
    %c0_i32_1 = arith.constant 0 : i32
    return %c0_i32, %c0_i32_0 : i32, i32
  }
  func.func @transform_6(%arg0: i32) -> (i32, i32) {
    %c0_i32 = arith.constant 0 : i32
    %c0_i32_0 = arith.constant 0 : i32
    %c0_i32_1 = arith.constant 0 : i32
    return %c0_i32, %c0_i32_0 : i32, i32
  }
  func.func @transform_7(%arg0: i32) -> (i32, i32) {
    %c0_i32 = arith.constant 0 : i32
    %c0_i32_0 = arith.constant 0 : i32
    %c0_i32_1 = arith.constant 0 : i32
    return %c0_i32, %c0_i32_0 : i32, i32
  }
  func.func @transform_8(%arg0: i32) -> i32 {
    %c0_i32 = arith.constant 0 : i32
    %c0_i32_0 = arith.constant 0 : i32
    return %c0_i32 : i32
  }
  func.func @transform_9(%arg0: i32) -> (i32, i32, i32) {
    %c0_i32 = arith.constant 0 : i32
    %c0_i32_0 = arith.constant 0 : i32
    %c0_i32_1 = arith.constant 0 : i32
    return %arg0, %c0_i32, %c0_i32_0 : i32, i32, i32
  }
}

</mosaic_0001>

<bundles_post_ra>
// kernel: tpu_custom_call.1
= control target key start
LH: loop header
LB: loop body
LE: loop exit
PB: predicated region body
PF: predicated region fallthrough
CT: control target
= control target key end

     0   :  { %14 = vsyncpa [#allocation3], 0  ;;  %s1647_s0 = inlined_call_operand.vmem [shape: f32[1,16,8], index: 0, kind: input, shape index: {}]   ;;  %s1648_s1 = inlined_call_operand.vmem [shape: f32[16,8], index: 1, kind: input, shape index: {}]   ;;  %s1649_s2 = inlined_call_operand.vmem [shape: f32[1,16,8], index: 2, kind: input, shape index: {}]   ;;  %s1650_s3 = inlined_call_operand.vmem [shape: f32[8,1,16,8], index: 3, kind: input, shape index: {}]   ;;  %s1651_s4 = inlined_call_operand.vmem [shape: f32[8,1,32], index: 4, kind: input, shape index: {}]   ;;  %s1652_s5 = inlined_call_operand.vmem [shape: bf16[8,32], index: 5, kind: input, shape index: {}]   ;;  %s1653_s6 = inlined_call_operand.vmem [shape: bf16[32,8], index: 6, kind: input, shape index: {}]   ;;  %s1654_s7 = inlined_call_operand.vmem [shape: f32[1,8], index: 7, kind: input, shape index: {}]   ;;  %s1655_s8 = inlined_call_operand.vmem [shape: f32[24], index: 8, kind: input, shape index: {}]   ;;  %s1656_s9 = inlined_call_operand.vmem [shape: f32[1,16,8], index: 9, kind: output, shape index: {}]  }
   0x1   :  { %s37_s11 = sshll.u32 %s1655_s8, 4  ;;  %s38_s11 = int_to_ptr.vmem [resolvable:$true] %s37_s11 }
   0x2   :  { %s1303_s12 = scalar_lea.vmem %s38_s11, 16  ;;  %p1308_p1 = scmp.lt.s32.totalorder %s38_s11, %s38_s11 }
   0x3   :  { %p1304_p0 = scmp.ne.s32.totalorder %s38_s11, %s1303_s12  ;;  %p1309_p2 = scmp.lt.s32.totalorder %s1303_s12, %s1303_s12 }
   0x5   :  { %p1310_p3 = por %p1309_p2, %p1308_p1 }
   0x7   :  { %p1311_p4 = pnand %p1310_p3, %p1304_p0 }
   0x9   :  { %1314 = shalt.err (!%p1311_p4)
}
   0xa   :  { %s1317_s13 = smov [#allocation2]  }
   0xb   :  { %40 = dma.vmem_to_smem %s38_s11, 16, %s1317_s13, [#allocation3]  }
   0xc   :  { %1315 = dma.done.wait [#allocation3], 16  }
   0xd   :  { %1316 = vsyncadd [#allocation3], 4294967280 }
   0xe   :  { %44 = sfence }
   0xf   :  { %v50_v0 = vld [vmem:[%s1652_s5] sm:$0xf]  ;;  %vm74_vm0 = vcmask 1043456   ;;  %v1318_v2 = vmov 0.0   ;;  %vm1319_vm1 = vmmov 0   ;;  %v1389_v4 = vld [vmem:[%s1648_s1 + $0x8] sm:$0xff] }
  0x10   :  { %v1379_v1 = vld [vmem:[%s1648_s1] sm:$0xff]  ;;  %1186 = vmatprep.subr.bf16.mxu0 %v1318_v2  ;;  %v1382_v3 = vsel %vm74_vm0, %v50_v0, 0  ;;  %1188 = vmatprep.mubr.msk.bf16.mxu0 %vm1319_vm1, %v1318_v2  ;;  %v1400_v6 = vld [vmem:[%s1649_s2 + $0x8] sm:$0xff]  ;;  %vm70_vm2 = vcmask 64512   ;;  %vm140_vm3 = vcmask 261120   ;;  %s1081_s29 = sld [smem:[#allocation2 + $0x8]] }
  0x11   :  { %v1394_v5 = vld [vmem:[%s1649_s2] sm:$0xff]  ;;  %1187 = vmatpush3.bf16.msra.mxu0 %v1382_v3  ;;  %v57_v8 = vld [vmem:[%s1647_s0 + $0x8] sm:$0xff]  ;;  %1192 = vmatprep.subr.bf16.mxu1 %v1318_v2  ;;  %s1082_s30 = sld [smem:[#allocation2 + $0x10]]  ;;  %s1087_s8 = sld [smem:[#allocation2 + $0x1]] }
  0x12   :  { %v56_v7 = vld [vmem:[%s1647_s0] sm:$0xff]  ;;  %v59_v10 = vmul.f32 %v57_v8, %v1389_v4  ;;  %1196 = vmatprep.mubr.msk.bf16.mxu1 %vm1319_vm1, %v1318_v2  ;;  %1200 = vmatprep.subr.bf16.mxu0 %v1318_v2  ;;  %v1431_v15 = vld [vmem:[%s1653_s6 + $0x8] sm:$0xff]   ;;  %s1088_s17 = sld [smem:[#allocation2 + $0x9]]  ;;  %v1090_v8 = vld [vmem:[%s1650_s3 + $0x10] sm:$0xff]  ;;  %s1096_s24 = sld [smem:[#allocation2 + $0x2]] }
  0x13   :  { %v58_v9 = vmul.f32 %v56_v7, %v1379_v1  ;;  %v1424_v14 = vld [vmem:[%s1653_s6] sm:$0xff]   ;;  %s185_s6 = sld [smem:[#allocation2]]  ;;  %v197_v36 = vld [vmem:[%s1650_s3 + $0x8] sm:$0xff]  ;;  %s1089_s18 = sld [smem:[#allocation2 + $0x11]] }
  0x14   :  { %v61_v12 = vadd.f32 %v59_v10, %v1400_v6  ;;  %1193 = vmatpush3.bf16.msra.mxu1 %v1424_v14  ;;  %v1075_v16 = vld [vmem:[%s1651_s4] ss:$0 sm:$0xff]  ;;  %v1084_v53 = vld [vmem:[%s1651_s4 + $0x1] ss:$0 sm:$0xff]  ;;  %s1097_s25 = sld [smem:[#allocation2 + $0xa]]  ;;  %s1107_s10 = sld [smem:[#allocation2 + $0x13]] }
  0x15   :  { %v60_v11 = vadd.f32 %v58_v9, %v1394_v5  ;;  %1194 = vmatprep.subr.bf16.mxu1 %v1318_v2  ;;  %v1448_v26 = vld [vmem:[%s1654_s7] ss:$0 sm:$0xff]  ;;  %s1098_s0 = sld [smem:[#allocation2 + $0x12]]  ;;  %s1114_s16 = sld [smem:[#allocation2 + $0x4]] }
  0x16   :  { %v191_v29 = vstv %s1081_s29  ;;  %v196_v30 = vld [vmem:[%s1650_s3] sm:$0xff]  ;;  %s1105_s29 = sld [smem:[#allocation2 + $0x3]]  ;;  %s1123_s23 = sld [smem:[#allocation2 + $0x5]] }
  0x17   :  { %v62_v13 = vpack.c.bf16 %v61_v12, %v60_v11  ;;  %v198_v31 = vstv %s1082_s30  ;;  %v310_v0 = vstv %s1087_s8  ;;  %s1106_s30 = sld [smem:[#allocation2 + $0xb]]  ;;  %s1115_s8 = sld [smem:[#allocation2 + $0xc]] }
  0x18   :  { %1195 = vmatpush3.bf16.msra.mxu1 %v1431_v15  ;;  %v199_v38 = vmul.f32 %v198_v31, %v196_v30  ;;  %v200_v44 = vmul.f32 %v198_v31, %v197_v36  ;;  %v313_v7 = vstv %s1088_s17  ;;  %s1116_s17 = sld [smem:[#allocation2 + $0x14]]  ;;  %s1141_s7 = sld [smem:[#allocation2 + $0x7]] }
  0x19   :  { %1189 = vmatmul.mubr.msk.bf16.vlgmr.msra.gmra.mrb[0].mxu0 %vm70_vm2, %v62_v13  ;;  %1206 = vmatprep.subr.bf16.mxu1 %v1318_v2  ;;  %v188_v27 = vstv %s185_s6  ;;  %v321_v9 = vstv %s1089_s18  ;;  %v1091_v13 = vld [vmem:[%s1650_s3 + $0x18] sm:$0xff]  ;;  %s1132_s6 = sld [smem:[#allocation2 + $0x6]] }
  0x1a   :  { %1201 = vmatpush3.bf16.msra.mxu0 %v1382_v3  ;;  %1202 = vmatprep.mubr.msk.bf16.mxu0 %vm1319_vm1, %v1318_v2  ;;  %v189_v33 = vmul.f32 %v188_v27, %v60_v11  ;;  %v190_v40 = vmul.f32 %v188_v27, %v61_v12 }
  0x1b   :  { %1214 = vmatprep.subr.bf16.mxu0 %v1318_v2 }
  0xec   :  { %v112_v17 = vpop.f32.mrb[0].mxu0 }
  0xed   :  { %v113_v18 = vadd.f32 %v1075_v16, %v112_v17  ;;  %v1190_v19 = vpop.f32.mrb[1].mxu0 }
  0xee   :  { %v115_v20 = vpop.f32.mrb[2].mxu0 }
  0xef   :  { %v116_v21 = vadd.f32 %v1075_v16, %v115_v20  ;;  %v1191_v22 = vpop.f32.mrb[3].mxu0  ;;  %v119_v23 = vmax.f32 %v113_v18, 0.0  ;;  %v322_v18 = vmul.f32 %v1090_v8, %v321_v9 }
  0xf1   :  { %v120_v24 = vmax.f32 %v116_v21, 0.0 }
  0xf3   :  { %v121_v25 = vpack.c.bf16 %v120_v24, %v119_v23  ;;  %v323_v24 = vmul.f32 %v1091_v13, %v321_v9 }
  0xf5   :  { %1197 = vmatmul.mubr.msk.bf16.vlgmr.msra.gmra.mrb[0].mxu1 %vm140_vm3, %v121_v25 }
  0xf6   :  { %1207 = vmatpush3.bf16.msra.mxu1 %v1424_v14  ;;  %1210 = vmatprep.mubr.msk.bf16.mxu1 %vm1319_vm1, %v1318_v2 }
  0xf7   :  { %1208 = vmatprep.subr.bf16.mxu1 %v1318_v2 }
  0xfa   :  { %1209 = vmatpush3.bf16.msra.mxu1 %v1431_v15 }
  0xfb   :  { %1220 = vmatprep.subr.bf16.mxu1 %v1318_v2 }
 0x1c8   :  { %v178_v28 = vpop.f32.mrb[0].mxu1 }
 0x1c9   :  { %v179_v32 = vadd.f32 %v1448_v26, %v178_v28  ;;  %v1198_v34 = vpop.f32.mrb[1].mxu1 }
 0x1ca   :  { %v181_v35 = vpop.f32.mrb[2].mxu1  ;;  %v1093_v34 = vld [vmem:[%s1651_s4 + $0x2] ss:$0 sm:$0xff] }
 0x1cb   :  { %v192_v37 = vmul.f32 %v191_v29, %v179_v32  ;;  %v182_v39 = vadd.f32 %v1448_v26, %v181_v35  ;;  %v1199_v41 = vpop.f32.mrb[3].mxu1 }
 0x1cd   :  { %v194_v42 = vsub.f32 %v189_v33, %v192_v37  ;;  %v193_v43 = vmul.f32 %v191_v29, %v182_v39 }
 0x1cf   :  { %v201_v45 = vadd.f32 %v199_v38, %v194_v42  ;;  %v195_v46 = vsub.f32 %v190_v40, %v193_v43 }
 0x1d1   :  { %v203_v47 = vmul.f32 %v201_v45, %v1379_v1  ;;  %v202_v48 = vadd.f32 %v200_v44, %v195_v46  ;;  %v433_v45 = vstv %s1096_s24  ;;  %v436_v46 = vstv %s1097_s25  ;;  %s1124_s24 = sld [smem:[#allocation2 + $0xd]] }
 0x1d2   :  { %s1125_s25 = sld [smem:[#allocation2 + $0x15]] }
 0x1d3   :  { %v204_v49 = vmul.f32 %v202_v48, %v1389_v4  ;;  %v205_v50 = vadd.f32 %v203_v47, %v1394_v5  ;;  %v1099_v47 = vld [vmem:[%s1650_s3 + $0x20] sm:$0xff]  ;;  %v444_v48 = vstv %s1098_s0 }
 0x1d5   :  { %v206_v51 = vadd.f32 %v204_v49, %v1400_v6  ;;  %v311_v16 = vmul.f32 %v310_v0, %v205_v50 }
 0x1d7   :  { %v207_v52 = vpack.c.bf16 %v206_v51, %v205_v50  ;;  %v312_v22 = vmul.f32 %v310_v0, %v206_v51 }
 0x1d9   :  { %1203 = vmatmul.mubr.msk.bf16.vlgmr.msra.gmra.mrb[4].mxu0 %vm70_vm2, %v207_v52  ;;  %v1100_v52 = vld [vmem:[%s1650_s3 + $0x28] sm:$0xff] }
 0x1da   :  { %1215 = vmatpush3.bf16.msra.mxu0 %v1382_v3  ;;  %1216 = vmatprep.mubr.msk.bf16.mxu0 %vm1319_vm1, %v1318_v2 }
 0x1db   :  { %1228 = vmatprep.subr.bf16.mxu0 %v1318_v2 }
 0x2ac   :  { %v253_v54 = vpop.f32.mrb[4].mxu0 }
 0x2ad   :  { %v254_v55 = vadd.f32 %v1084_v53, %v253_v54  ;;  %v1204_v56 = vpop.f32.mrb[5].mxu0 }
 0x2ae   :  { %v256_v57 = vpop.f32.mrb[6].mxu0 }
 0x2af   :  { %v257_v58 = vadd.f32 %v1084_v53, %v256_v57  ;;  %v1205_v59 = vpop.f32.mrb[7].mxu0  ;;  %v260_v60 = vmax.f32 %v254_v55, 0.0  ;;  %v445_v55 = vmul.f32 %v1099_v47, %v444_v48 }
 0x2b1   :  { %v261_v61 = vmax.f32 %v257_v58, 0.0 }
 0x2b3   :  { %v262_v62 = vpack.c.bf16 %v261_v61, %v260_v60  ;;  %v446_v61 = vmul.f32 %v1100_v52, %v444_v48 }
 0x2b5   :  { %1211 = vmatmul.mubr.msk.bf16.vlgmr.msra.gmra.mrb[4].mxu1 %vm140_vm3, %v262_v62 }
 0x2b6   :  { %1221 = vmatpush3.bf16.msra.mxu1 %v1424_v14  ;;  %1224 = vmatprep.mubr.msk.bf16.mxu1 %vm1319_vm1, %v1318_v2 }
 0x2b7   :  { %1222 = vmatprep.subr.bf16.mxu1 %v1318_v2 }
 0x2ba   :  { %1223 = vmatpush3.bf16.msra.mxu1 %v1431_v15 }
 0x2bb   :  { %1234 = vmatprep.subr.bf16.mxu1 %v1318_v2 }
 0x388   :  { %v300_v63 = vpop.f32.mrb[4].mxu1 }
 0x389   :  { %v301_v10 = vadd.f32 %v1448_v26, %v300_v63  ;;  %v1212_v11 = vpop.f32.mrb[5].mxu1 }
 0x38a   :  { %v303_v12 = vpop.f32.mrb[6].mxu1 }
 0x38b   :  { %v314_v17 = vmul.f32 %v313_v7, %v301_v10  ;;  %v304_v19 = vadd.f32 %v1448_v26, %v303_v12  ;;  %v1213_v20 = vpop.f32.mrb[7].mxu1  ;;  %v1102_v12 = vld [vmem:[%s1651_s4 + $0x3] ss:$0 sm:$0xff] }
 0x38d   :  { %v316_v21 = vsub.f32 %v311_v16, %v314_v17  ;;  %v315_v23 = vmul.f32 %v313_v7, %v304_v19 }
 0x38f   :  { %v324_v25 = vadd.f32 %v322_v18, %v316_v21  ;;  %v317_v27 = vsub.f32 %v312_v22, %v315_v23 }
 0x391   :  { %v326_v28 = vmul.f32 %v324_v25, %v1379_v1  ;;  %v325_v29 = vadd.f32 %v323_v24, %v317_v27  ;;  %v556_v25 = vstv %s1105_s29  ;;  %v559_v27 = vstv %s1106_s30  ;;  %s1133_s29 = sld [smem:[#allocation2 + $0xe]] }
 0x392   :  { %s1134_s30 = sld [smem:[#allocation2 + $0x16]] }
 0x393   :  { %v327_v30 = vmul.f32 %v325_v29, %v1389_v4  ;;  %v328_v31 = vadd.f32 %v326_v28, %v1394_v5  ;;  %v1108_v28 = vld [vmem:[%s1650_s3 + $0x30] sm:$0xff]  ;;  %v567_v29 = vstv %s1107_s10 }
 0x395   :  { %v329_v32 = vadd.f32 %v327_v30, %v1400_v6  ;;  %v434_v53 = vmul.f32 %v433_v45, %v328_v31 }
 0x397   :  { %v330_v33 = vpack.c.bf16 %v329_v32, %v328_v31  ;;  %v435_v59 = vmul.f32 %v433_v45, %v329_v32 }
 0x399   :  { %1217 = vmatmul.mubr.msk.bf16.vlgmr.msra.gmra.mrb[8].mxu0 %vm70_vm2, %v330_v33  ;;  %v1109_v33 = vld [vmem:[%s1650_s3 + $0x38] sm:$0xff] }
 0x39a   :  { %1229 = vmatpush3.bf16.msra.mxu0 %v1382_v3  ;;  %1230 = vmatprep.mubr.msk.bf16.mxu0 %vm1319_vm1, %v1318_v2 }
 0x39b   :  { %1242 = vmatprep.subr.bf16.mxu0 %v1318_v2 }
 0x46c   :  { %v376_v35 = vpop.f32.mrb[8].mxu0 }
 0x46d   :  { %v377_v36 = vadd.f32 %v1093_v34, %v376_v35  ;;  %v1218_v37 = vpop.f32.mrb[9].mxu0 }
 0x46e   :  { %v379_v38 = vpop.f32.mrb[10].mxu0 }
 0x46f   :  { %v380_v39 = vadd.f32 %v1093_v34, %v379_v38  ;;  %v1219_v40 = vpop.f32.mrb[11].mxu0  ;;  %v383_v41 = vmax.f32 %v377_v36, 0.0  ;;  %v568_v36 = vmul.f32 %v1108_v28, %v567_v29 }
 0x471   :  { %v384_v42 = vmax.f32 %v380_v39, 0.0 }
 0x473   :  { %v385_v43 = vpack.c.bf16 %v384_v42, %v383_v41  ;;  %v569_v42 = vmul.f32 %v1109_v33, %v567_v29 }
 0x475   :  { %1225 = vmatmul.mubr.msk.bf16.vlgmr.msra.gmra.mrb[8].mxu1 %vm140_vm3, %v385_v43 }
 0x476   :  { %1235 = vmatpush3.bf16.msra.mxu1 %v1424_v14  ;;  %1238 = vmatprep.mubr.msk.bf16.mxu1 %vm1319_vm1, %v1318_v2 }
 0x477   :  { %1236 = vmatprep.subr.bf16.mxu1 %v1318_v2 }
 0x47a   :  { %1237 = vmatpush3.bf16.msra.mxu1 %v1431_v15 }
 0x47b   :  { %1248 = vmatprep.subr.bf16.mxu1 %v1318_v2 }
 0x548   :  { %v423_v44 = vpop.f32.mrb[8].mxu1 }
 0x549   :  { %v424_v49 = vadd.f32 %v1448_v26, %v423_v44  ;;  %v1226_v50 = vpop.f32.mrb[9].mxu1 }
 0x54a   :  { %v426_v51 = vpop.f32.mrb[10].mxu1 }
 0x54b   :  { %v437_v54 = vmul.f32 %v436_v46, %v424_v49  ;;  %v427_v56 = vadd.f32 %v1448_v26, %v426_v51  ;;  %v1227_v57 = vpop.f32.mrb[11].mxu1  ;;  %v1111_v51 = vld [vmem:[%s1651_s4 + $0x4] ss:$0 sm:$0xff] }
 0x54d   :  { %v439_v58 = vsub.f32 %v434_v53, %v437_v54  ;;  %v438_v60 = vmul.f32 %v436_v46, %v427_v56 }
 0x54f   :  { %v447_v62 = vadd.f32 %v445_v55, %v439_v58  ;;  %v440_v63 = vsub.f32 %v435_v59, %v438_v60 }
 0x551   :  { %v449_v0 = vmul.f32 %v447_v62, %v1379_v1  ;;  %v448_v7 = vadd.f32 %v446_v61, %v440_v63  ;;  %v679_v62 = vstv %s1114_s16  ;;  %v682_v63 = vstv %s1115_s8  ;;  %s1142_s16 = sld [smem:[#allocation2 + $0xf]] }
 0x552   :  { %s1143_s8 = sld [smem:[#allocation2 + $0x17]] }
 0x553   :  { %v450_v8 = vmul.f32 %v448_v7, %v1389_v4  ;;  %v451_v9 = vadd.f32 %v449_v0, %v1394_v5  ;;  %v1117_v0 = vld [vmem:[%s1650_s3 + $0x40] sm:$0xff]  ;;  %v690_v7 = vstv %s1116_s17 }
 0x555   :  { %v452_v10 = vadd.f32 %v450_v8, %v1400_v6  ;;  %v557_v34 = vmul.f32 %v556_v25, %v451_v9 }
 0x557   :  { %v453_v11 = vpack.c.bf16 %v452_v10, %v451_v9  ;;  %v558_v40 = vmul.f32 %v556_v25, %v452_v10 }
 0x559   :  { %1231 = vmatmul.mubr.msk.bf16.vlgmr.msra.gmra.mrb[12].mxu0 %vm70_vm2, %v453_v11  ;;  %v1118_v11 = vld [vmem:[%s1650_s3 + $0x48] sm:$0xff] }
 0x55a   :  { %1243 = vmatpush3.bf16.msra.mxu0 %v1382_v3  ;;  %1244 = vmatprep.mubr.msk.bf16.mxu0 %vm1319_vm1, %v1318_v2 }
 0x55b   :  { %1256 = vmatprep.subr.bf16.mxu0 %v1318_v2 }
 0x62c   :  { %v499_v13 = vpop.f32.mrb[12].mxu0 }
 0x62d   :  { %v500_v16 = vadd.f32 %v1102_v12, %v499_v13  ;;  %v1232_v17 = vpop.f32.mrb[13].mxu0 }
 0x62e   :  { %v502_v18 = vpop.f32.mrb[14].mxu0 }
 0x62f   :  { %v503_v19 = vadd.f32 %v1102_v12, %v502_v18  ;;  %v1233_v20 = vpop.f32.mrb[15].mxu0  ;;  %v506_v21 = vmax.f32 %v500_v16, 0.0  ;;  %v691_v16 = vmul.f32 %v1117_v0, %v690_v7 }
 0x631   :  { %v507_v22 = vmax.f32 %v503_v19, 0.0 }
 0x633   :  { %v508_v23 = vpack.c.bf16 %v507_v22, %v506_v21  ;;  %v692_v22 = vmul.f32 %v1118_v11, %v690_v7 }
 0x635   :  { %1239 = vmatmul.mubr.msk.bf16.vlgmr.msra.gmra.mrb[12].mxu1 %vm140_vm3, %v508_v23 }
 0x636   :  { %1249 = vmatpush3.bf16.msra.mxu1 %v1424_v14  ;;  %1252 = vmatprep.mubr.msk.bf16.mxu1 %vm1319_vm1, %v1318_v2 }
 0x637   :  { %1250 = vmatprep.subr.bf16.mxu1 %v1318_v2 }
 0x63a   :  { %1251 = vmatpush3.bf16.msra.mxu1 %v1431_v15 }
 0x63b   :  { %1262 = vmatprep.subr.bf16.mxu1 %v1318_v2 }
 0x708   :  { %v546_v24 = vpop.f32.mrb[12].mxu1 }
 0x709   :  { %v547_v30 = vadd.f32 %v1448_v26, %v546_v24  ;;  %v1240_v31 = vpop.f32.mrb[13].mxu1 }
 0x70a   :  { %v549_v32 = vpop.f32.mrb[14].mxu1 }
 0x70b   :  { %v560_v35 = vmul.f32 %v559_v27, %v547_v30  ;;  %v550_v37 = vadd.f32 %v1448_v26, %v549_v32  ;;  %v1241_v38 = vpop.f32.mrb[15].mxu1  ;;  %v1120_v32 = vld [vmem:[%s1651_s4 + $0x5] ss:$0 sm:$0xff] }
 0x70d   :  { %v562_v39 = vsub.f32 %v557_v34, %v560_v35  ;;  %v561_v41 = vmul.f32 %v559_v27, %v550_v37 }
 0x70f   :  { %v570_v43 = vadd.f32 %v568_v36, %v562_v39  ;;  %v563_v44 = vsub.f32 %v558_v40, %v561_v41 }
 0x711   :  { %v572_v45 = vmul.f32 %v570_v43, %v1379_v1  ;;  %v571_v46 = vadd.f32 %v569_v42, %v563_v44  ;;  %v802_v43 = vstv %s1123_s23  ;;  %v805_v44 = vstv %s1124_s24 }
 0x713   :  { %v573_v47 = vmul.f32 %v571_v46, %v1389_v4  ;;  %v574_v48 = vadd.f32 %v572_v45, %v1394_v5  ;;  %v1126_v45 = vld [vmem:[%s1650_s3 + $0x50] sm:$0xff]  ;;  %v813_v46 = vstv %s1125_s25 }
 0x715   :  { %v575_v49 = vadd.f32 %v573_v47, %v1400_v6  ;;  %v680_v12 = vmul.f32 %v679_v62, %v574_v48 }
 0x717   :  { %v576_v50 = vpack.c.bf16 %v575_v49, %v574_v48  ;;  %v681_v20 = vmul.f32 %v679_v62, %v575_v49 }
 0x719   :  { %1245 = vmatmul.mubr.msk.bf16.vlgmr.msra.gmra.mrb[16].mxu0 %vm70_vm2, %v576_v50  ;;  %v1127_v50 = vld [vmem:[%s1650_s3 + $0x58] sm:$0xff] }
 0x71a   :  { %1257 = vmatpush3.bf16.msra.mxu0 %v1382_v3  ;;  %1258 = vmatprep.mubr.msk.bf16.mxu0 %vm1319_vm1, %v1318_v2 }
 0x71b   :  { %1270 = vmatprep.subr.bf16.mxu0 %v1318_v2 }
 0x7ec   :  { %v622_v52 = vpop.f32.mrb[16].mxu0 }
 0x7ed   :  { %v623_v53 = vadd.f32 %v1111_v51, %v622_v52  ;;  %v1246_v54 = vpop.f32.mrb[17].mxu0 }
 0x7ee   :  { %v625_v55 = vpop.f32.mrb[18].mxu0 }
 0x7ef   :  { %v626_v56 = vadd.f32 %v1111_v51, %v625_v55  ;;  %v1247_v57 = vpop.f32.mrb[19].mxu0  ;;  %v629_v58 = vmax.f32 %v623_v53, 0.0  ;;  %v814_v53 = vmul.f32 %v1126_v45, %v813_v46  ;;  %v1138_v45 = vld [vmem:[%s1651_s4 + $0x7] ss:$0 sm:$0xff] }
 0x7f1   :  { %v630_v59 = vmax.f32 %v626_v56, 0.0 }
 0x7f3   :  { %v631_v60 = vpack.c.bf16 %v630_v59, %v629_v58  ;;  %v815_v59 = vmul.f32 %v1127_v50, %v813_v46 }
 0x7f5   :  { %1253 = vmatmul.mubr.msk.bf16.vlgmr.msra.gmra.mrb[16].mxu1 %vm140_vm3, %v631_v60 }
 0x7f6   :  { %1263 = vmatpush3.bf16.msra.mxu1 %v1424_v14  ;;  %1266 = vmatprep.mubr.msk.bf16.mxu1 %vm1319_vm1, %v1318_v2 }
 0x7f7   :  { %1264 = vmatprep.subr.bf16.mxu1 %v1318_v2 }
 0x7fa   :  { %1265 = vmatpush3.bf16.msra.mxu1 %v1431_v15 }
 0x7fb   :  { %1276 = vmatprep.subr.bf16.mxu1 %v1318_v2 }
 0x8c8   :  { %v669_v61 = vpop.f32.mrb[16].mxu1 }
 0x8c9   :  { %v670_v8 = vadd.f32 %v1448_v26, %v669_v61  ;;  %v1254_v9 = vpop.f32.mrb[17].mxu1 }
 0x8ca   :  { %v672_v10 = vpop.f32.mrb[18].mxu1 }
 0x8cb   :  { %v683_v13 = vmul.f32 %v682_v63, %v670_v8  ;;  %v673_v17 = vadd.f32 %v1448_v26, %v672_v10  ;;  %v1255_v18 = vpop.f32.mrb[19].mxu1  ;;  %v1129_v10 = vld [vmem:[%s1651_s4 + $0x6] ss:$0 sm:$0xff] }
 0x8cd   :  { %v685_v19 = vsub.f32 %v680_v12, %v683_v13  ;;  %v684_v21 = vmul.f32 %v682_v63, %v673_v17 }
 0x8cf   :  { %v693_v23 = vadd.f32 %v691_v16, %v685_v19  ;;  %v686_v24 = vsub.f32 %v681_v20, %v684_v21 }
 0x8d1   :  { %v695_v25 = vmul.f32 %v693_v23, %v1379_v1  ;;  %v694_v27 = vadd.f32 %v692_v22, %v686_v24  ;;  %v925_v22 = vstv %s1132_s6  ;;  %v928_v23 = vstv %s1133_s29  ;;  %v1135_v24 = vld [vmem:[%s1650_s3 + $0x60] sm:$0xff] }
 0x8d3   :  { %v696_v28 = vmul.f32 %v694_v27, %v1389_v4  ;;  %v697_v29 = vadd.f32 %v695_v25, %v1394_v5  ;;  %v936_v25 = vstv %s1134_s30 }
 0x8d5   :  { %v698_v30 = vadd.f32 %v696_v28, %v1400_v6  ;;  %v803_v51 = vmul.f32 %v802_v43, %v697_v29 }
 0x8d7   :  { %v699_v31 = vpack.c.bf16 %v698_v30, %v697_v29  ;;  %v804_v57 = vmul.f32 %v802_v43, %v698_v30  ;;  %v937_v30 = vmul.f32 %v1135_v24, %v936_v25 }
 0x8d9   :  { %1259 = vmatmul.mubr.msk.bf16.vlgmr.msra.gmra.mrb[20].mxu0 %vm70_vm2, %v699_v31 }
 0x8da   :  { %1271 = vmatpush3.bf16.msra.mxu0 %v1382_v3  ;;  %1272 = vmatprep.mubr.msk.bf16.mxu0 %vm1319_vm1, %v1318_v2 }
 0x8db   :  { %1284 = vmatprep.subr.bf16.mxu0 %v1318_v2 }
 0x9ac   :  { %v745_v33 = vpop.f32.mrb[20].mxu0 }
 0x9ad   :  { %v746_v34 = vadd.f32 %v1120_v32, %v745_v33  ;;  %v1260_v35 = vpop.f32.mrb[21].mxu0 }
 0x9ae   :  { %v748_v36 = vpop.f32.mrb[22].mxu0 }
 0x9af   :  { %v749_v37 = vadd.f32 %v1120_v32, %v748_v36  ;;  %v1261_v38 = vpop.f32.mrb[23].mxu0  ;;  %v752_v39 = vmax.f32 %v746_v34, 0.0 }
 0x9b1   :  { %v753_v40 = vmax.f32 %v749_v37, 0.0 }
 0x9b3   :  { %v754_v41 = vpack.c.bf16 %v753_v40, %v752_v39 }
 0x9b5   :  { %1267 = vmatmul.mubr.msk.bf16.vlgmr.msra.gmra.mrb[20].mxu1 %vm140_vm3, %v754_v41 }
 0x9b6   :  { %1277 = vmatpush3.bf16.msra.mxu1 %v1424_v14  ;;  %1280 = vmatprep.mubr.msk.bf16.mxu1 %vm1319_vm1, %v1318_v2 }
 0x9b7   :  { %1278 = vmatprep.subr.bf16.mxu1 %v1318_v2 }
 0x9ba   :  { %1279 = vmatpush3.bf16.msra.mxu1 %v1431_v15 }
 0x9bb   :  { %1290 = vmatprep.subr.bf16.mxu1 %v1318_v2 }
 0xa88   :  { %v792_v42 = vpop.f32.mrb[20].mxu1 }
 0xa89   :  { %v793_v47 = vadd.f32 %v1448_v26, %v792_v42  ;;  %v1268_v48 = vpop.f32.mrb[21].mxu1 }
 0xa8a   :  { %v795_v49 = vpop.f32.mrb[22].mxu1 }
 0xa8b   :  { %v806_v52 = vmul.f32 %v805_v44, %v793_v47  ;;  %v796_v54 = vadd.f32 %v1448_v26, %v795_v49  ;;  %v1269_v55 = vpop.f32.mrb[23].mxu1 }
 0xa8d   :  { %v808_v56 = vsub.f32 %v803_v51, %v806_v52  ;;  %v807_v58 = vmul.f32 %v805_v44, %v796_v54 }
 0xa8f   :  { %v816_v60 = vadd.f32 %v814_v53, %v808_v56  ;;  %v809_v61 = vsub.f32 %v804_v57, %v807_v58  ;;  %v1048_v56 = vstv %s1141_s7  ;;  %v1051_v57 = vstv %s1142_s16  ;;  %v1144_v58 = vld [vmem:[%s1650_s3 + $0x70] sm:$0xff] }
 0xa91   :  { %v818_v62 = vmul.f32 %v816_v60, %v1379_v1  ;;  %v817_v63 = vadd.f32 %v815_v59, %v809_v61  ;;  %v1059_v59 = vstv %s1143_s8 }
 0xa93   :  { %v819_v0 = vmul.f32 %v817_v63, %v1389_v4  ;;  %v820_v7 = vadd.f32 %v818_v62, %v1394_v5  ;;  %v1145_v63 = vld [vmem:[%s1650_s3 + $0x78] sm:$0xff] }
 0xa95   :  { %v821_v8 = vadd.f32 %v819_v0, %v1400_v6 }
 0xa97   :  { %v822_v9 = vpack.c.bf16 %v821_v8, %v820_v7  ;;  %v927_v34 = vmul.f32 %v925_v22, %v821_v8  ;;  %v1060_v8 = vmul.f32 %v1144_v58, %v1059_v59 }
 0xa99   :  { %1273 = vmatmul.mubr.msk.bf16.vlgmr.msra.gmra.mrb[24].mxu0 %vm70_vm2, %v822_v9 }
 0xa9a   :  { %1285 = vmatpush3.bf16.msra.mxu0 %v1382_v3  ;;  %1286 = vmatprep.mubr.msk.bf16.mxu0 %vm1319_vm1, %v1318_v2 }
 0xb6c   :  { %v868_v11 = vpop.f32.mrb[24].mxu0 }
 0xb6d   :  { %v869_v12 = vadd.f32 %v1129_v10, %v868_v11  ;;  %v1274_v13 = vpop.f32.mrb[25].mxu0 }
 0xb6e   :  { %v871_v16 = vpop.f32.mrb[26].mxu0 }
 0xb6f   :  { %v872_v17 = vadd.f32 %v1129_v10, %v871_v16  ;;  %v1275_v18 = vpop.f32.mrb[27].mxu0  ;;  %v875_v19 = vmax.f32 %v869_v12, 0.0  ;;  %v1061_v16 = vmul.f32 %v1145_v63, %v1059_v59 }
 0xb71   :  { %v876_v20 = vmax.f32 %v872_v17, 0.0 }
 0xb73   :  { %v877_v21 = vpack.c.bf16 %v876_v20, %v875_v19 }
 0xb75   :  { %1281 = vmatmul.mubr.msk.bf16.vlgmr.msra.gmra.mrb[24].mxu1 %vm140_vm3, %v877_v21 }
 0xb76   :  { %1291 = vmatpush3.bf16.msra.mxu1 %v1424_v14  ;;  %1294 = vmatprep.mubr.msk.bf16.mxu1 %vm1319_vm1, %v1318_v2 }
 0xb77   :  { %1292 = vmatprep.subr.bf16.mxu1 %v1318_v2  ;;  %v1136_v2 = vld [vmem:[%s1650_s3 + $0x68] sm:$0xff] }
 0xb78   :  { %v938_v36 = vmul.f32 %v1136_v2, %v936_v25 }
 0xb7a   :  { %1293 = vmatpush3.bf16.msra.mxu1 %v1431_v15  ;;  %v926_v15 = vmul.f32 %v925_v22, %v820_v7 }
 0xc48   :  { %v915_v3 = vpop.f32.mrb[24].mxu1 }
 0xc49   :  { %v916_v14 = vadd.f32 %v1448_v26, %v915_v3  ;;  %v1282_v27 = vpop.f32.mrb[25].mxu1 }
 0xc4a   :  { %v918_v28 = vpop.f32.mrb[26].mxu1 }
 0xc4b   :  { %v929_v29 = vmul.f32 %v928_v23, %v916_v14  ;;  %v919_v31 = vadd.f32 %v1448_v26, %v918_v28  ;;  %v1283_v32 = vpop.f32.mrb[27].mxu1 }
 0xc4d   :  { %v931_v33 = vsub.f32 %v926_v15, %v929_v29  ;;  %v930_v35 = vmul.f32 %v928_v23, %v919_v31 }
 0xc4f   :  { %v939_v37 = vadd.f32 %v937_v30, %v931_v33  ;;  %v932_v38 = vsub.f32 %v927_v34, %v930_v35 }
 0xc51   :  { %v941_v39 = vmul.f32 %v939_v37, %v1379_v1  ;;  %v940_v40 = vadd.f32 %v938_v36, %v932_v38 }
 0xc53   :  { %v942_v41 = vmul.f32 %v940_v40, %v1389_v4  ;;  %v943_v42 = vadd.f32 %v941_v39, %v1394_v5 }
 0xc55   :  { %v944_v43 = vadd.f32 %v942_v41, %v1400_v6  ;;  %v1049_v0 = vmul.f32 %v1048_v56, %v943_v42 }
 0xc57   :  { %v945_v44 = vpack.c.bf16 %v944_v43, %v943_v42  ;;  %v1050_v12 = vmul.f32 %v1048_v56, %v944_v43 }
 0xc59   :  { %1287 = vmatmul.mubr.msk.bf16.vlgmr.msra.gmra.mrb[28].mxu0 %vm70_vm2, %v945_v44 }
 0xd2c   :  { %v991_v46 = vpop.f32.mrb[28].mxu0 }
 0xd2d   :  { %v992_v47 = vadd.f32 %v1138_v45, %v991_v46  ;;  %v1288_v48 = vpop.f32.mrb[29].mxu0 }
 0xd2e   :  { %v994_v49 = vpop.f32.mrb[30].mxu0 }
 0xd2f   :  { %v995_v50 = vadd.f32 %v1138_v45, %v994_v49  ;;  %v1289_v51 = vpop.f32.mrb[31].mxu0  ;;  %v998_v52 = vmax.f32 %v992_v47, 0.0 }
 0xd31   :  { %v999_v53 = vmax.f32 %v995_v50, 0.0 }
 0xd33   :  { %v1000_v54 = vpack.c.bf16 %v999_v53, %v998_v52 }
 0xd35   :  { %1295 = vmatmul.mubr.msk.bf16.vlgmr.msra.gmra.mrb[28].mxu1 %vm140_vm3, %v1000_v54 }
 0xe08   :  { %v1038_v55 = vpop.f32.mrb[28].mxu1 }
 0xe09   :  { %v1039_v60 = vadd.f32 %v1448_v26, %v1038_v55  ;;  %v1296_v61 = vpop.f32.mrb[29].mxu1 }
 0xe0a   :  { %v1041_v62 = vpop.f32.mrb[30].mxu1 }
 0xe0b   :  { %v1052_v7 = vmul.f32 %v1051_v57, %v1039_v60  ;;  %v1042_v9 = vadd.f32 %v1448_v26, %v1041_v62  ;;  %v1297_v10 = vpop.f32.mrb[31].mxu1 }
 0xe0d   :  { %v1054_v11 = vsub.f32 %v1049_v0, %v1052_v7  ;;  %v1053_v13 = vmul.f32 %v1051_v57, %v1042_v9 }
 0xe0f   :  { %v1062_v17 = vadd.f32 %v1060_v8, %v1054_v11  ;;  %v1055_v18 = vsub.f32 %v1050_v12, %v1053_v13 }
 0xe11   :  { %v1064_v19 = vmul.f32 %v1062_v17, %v1379_v1  ;;  %v1063_v20 = vadd.f32 %v1061_v16, %v1055_v18 }
 0xe13   :  { %v1066_v21 = vadd.f32 %v1064_v19, %v1394_v5  ;;  %v1065_v3 = vmul.f32 %v1063_v20, %v1389_v4 }
 0xe15   :  { %1068 = vst.msk [vmem:[%s1656_s9] sm:$0xff] %vm70_vm2, %v1066_v21  ;;  %v1067_v26 = vadd.f32 %v1065_v3, %v1400_v6 }
 0xe17   :  { %1069 = vst.msk [vmem:[%s1656_s9 + $0x8] sm:$0xff] %vm70_vm2, %v1067_v26 }
 0xe18   :  { %1074 = vsyncpa [#allocation3], 1 }

</bundles_post_ra>
